<compile_context>
chip_gen: v6e
topology: v6e:2x2x1
jax: 0.10.0
libtpu: 0.0.40
codegen_flags: <defaults>
</compile_context>

<pallas_src>
import functools

import jax
import jax.numpy as jnp
from jax.experimental import pallas as pl
from jax.experimental.pallas import tpu as pltpu

ALPHA = 0.5
IGNORE_INDEX = 0
SMOOTH = 1.0
LANES = 128


def _loss_stats_kernel(pred_ref, tgt_ref, inter_ref, psum_ref, tsum_ref, ce_ref, *,
                       num_classes, ignore_index, n_valid, tiles_per_chunk,
                       mask_tail):
    # pred_ref: (1, C, TR, 128) logits   tgt_ref: (1, 1, TR, 128) int32
    # out refs: (1, C, 8, 128) / (1, 1, 8, 128) f32 resident accumulators.
    s = pl.program_id(2)

    @pl.when(s == 0)
    def _init():
        inter_ref[...] = jnp.zeros_like(inter_ref)
        psum_ref[...] = jnp.zeros_like(psum_ref)
        tsum_ref[...] = jnp.zeros_like(tsum_ref)
        ce_ref[...] = jnp.zeros_like(ce_ref)

    c = num_classes
    tgt = tgt_ref[0, 0]                                  # (TR, 128) int32
    tr, ln = tgt.shape
    nch = tr // 8

    # cast-on-load (bf16 logits supported); one dense (TR,128) slab per class
    logits = [pred_ref[0, j].astype(jnp.float32) for j in range(c)]

    if mask_tail:
        # Grid over-covers the array: mask out-of-range voxels by flat position and
        # sanitize the logits so garbage reads can't poison exp/log with NaN/Inf.
        tile_idx = pl.program_id(1) * tiles_per_chunk + s
        rows = tile_idx * tr + jax.lax.broadcasted_iota(jnp.int32, (tr, ln), 0)
        lanes = jax.lax.broadcasted_iota(jnp.int32, (tr, ln), 1)
        in_range = (rows * ln + lanes) < n_valid
        logits = [jnp.where(in_range, x, 0.0) for x in logits]
        valid_b = jnp.logical_and(tgt != ignore_index, in_range)
    else:
        valid_b = tgt != ignore_index

    valid = valid_b.astype(jnp.float32)                  # (TR, 128)
    tgt_eff = jnp.where(valid_b, tgt, -1)                # invalid voxels match no class

    # softmax over the class axis == plain elementwise max/add over C dense slabs
    m = logits[0]
    for x in logits[1:]:
        m = jnp.maximum(m, x)
    shifted = [x - m for x in logits]
    ex = [jnp.exp(x) for x in shifted]                   # EUP
    sum_ex = ex[0]
    for x in ex[1:]:
        sum_ex = sum_ex + x
    # valid mask folded into the reciprocal (one (TR,128) mul instead of C-wide muls)
    inv_v = pl.reciprocal(sum_ex, approx=False) * valid

    def chunk_sum(x):  # (TR,128) -> (8,128): VPU-only partial reduction, no XLU
        return jnp.sum(x.reshape(nch, 8, ln), axis=0)

    picked = jnp.zeros_like(valid)
    for j in range(c):
        t_j = (tgt_eff == j).astype(jnp.float32)         # masked one-hot slab
        p_j = ex[j] * inv_v                              # masked softmax prob slab
        picked = picked + t_j * shifted[j]
        inter_ref[0, j] = inter_ref[0, j] + chunk_sum(p_j * t_j)
        psum_ref[0, j] = psum_ref[0, j] + chunk_sum(p_j)
        tsum_ref[0, j] = tsum_ref[0, j] + chunk_sum(t_j)

    # CE per voxel: -log_softmax[target] = log(sum_ex) - shifted[target]
    ce_per = (jnp.log(sum_ex) - picked) * valid
    ce_ref[0, 0] = ce_ref[0, 0] + chunk_sum(ce_per)


def combined_loss(pred, target, *, alpha=ALPHA, ignore_index=IGNORE_INDEX,
                  smooth=SMOOTH, ts=32768):
    """pred: (N, C, D, H, W) float, target: (N, D, H, W) int (PyTorch conventions)."""
    N, C, D, H, W = pred.shape
    S = D * H * W

    # ---- dense re-layout: spatial -> (rows, 128 lanes); free reshape when S%128==0
    rem = S % LANES
    if rem:
        # TODO(synk): minimal pad (one copy) only when S is not a multiple of 128;
        # the lane-dense layout needs a whole number of 128-lane rows.
        pad = LANES - rem
        pred_k = jnp.pad(pred.reshape(N, C, S), ((0, 0), (0, 0), (0, pad)))
        tgt_k = jnp.pad(target.reshape(N, 1, S).astype(jnp.int32),
                        ((0, 0), (0, 0), (0, pad)), constant_values=ignore_index)
        Sr = (S + pad) // LANES
        pred_k = pred_k.reshape(N, C, Sr, LANES)
        tgt_k = tgt_k.reshape(N, 1, Sr, LANES)
    else:
        Sr = S // LANES
        pred_k = pred.reshape(N, C, Sr, LANES)
        tgt_k = target.reshape(N, 1, Sr, LANES).astype(jnp.int32)

    # ---- tile sizing: big lane-dense tiles (multiple of 1024 lanes) to amortize the
    # ~0.35us/step overhead; rows per tile is a multiple of 8 (sublane tiling).
    tr = max(8, min((ts // LANES) // 8 * 8, pl.cdiv(Sr, 8) * 8))
    n_s = pl.cdiv(Sr, tr)

    # ---- v7x megacore: if the batch alone can't fill both TensorCores, split the
    # spatial axis into 2 parallel chunks (harmless on single-TC v5e/v6e).
    P = 2 if (N == 1 and n_s % 2 == 0) else 1
    n_inner = n_s // P

    # grid may over-cover the (padded) array -> in-kernel position masking needed
    mask_tail = (n_s * tr) > Sr

    kernel = functools.partial(
        _loss_stats_kernel, num_classes=C, ignore_index=ignore_index, n_valid=S,
        tiles_per_chunk=n_inner, mask_tail=mask_tail)

    out_shapes = (
        jax.ShapeDtypeStruct((N * P, C, 8, LANES), jnp.float32),  # intersection
        jax.ShapeDtypeStruct((N * P, C, 8, LANES), jnp.float32),  # masked prob sum
        jax.ShapeDtypeStruct((N * P, C, 8, LANES), jnp.float32),  # masked target sum
        jax.ShapeDtypeStruct((N * P, 1, 8, LANES), jnp.float32),  # CE partial sum
    )

    in_block = lambda b, p, s: (b, 0, p * n_inner + s, 0)
    out_block = lambda b, p, s: (b * P + p, 0, 0, 0)

    grid_spec = pltpu.PrefetchScalarGridSpec(
        num_scalar_prefetch=0,
        grid=(N, P, n_inner),                            # (batch, chunk) parallel, spatial reduce
        in_specs=[
            pl.BlockSpec((1, C, tr, LANES), in_block),
            pl.BlockSpec((1, 1, tr, LANES), in_block),
        ],
        out_specs=[
            pl.BlockSpec((1, C, 8, LANES), out_block),
            pl.BlockSpec((1, C, 8, LANES), out_block),
            pl.BlockSpec((1, C, 8, LANES), out_block),
            pl.BlockSpec((1, 1, 8, LANES), out_block),
        ],
    )

    # VMEM budget: double-buffered input tiles + headroom for elementwise temps.
    # Set explicitly so large tiles also work under v5e's 16 MiB scoped default.
    itemsize = jnp.dtype(pred_k.dtype).itemsize
    tile_in = (C * itemsize + 4) * tr * LANES
    vmem_limit = int(min(max(2 * tile_in + 8 * C * tr * LANES * 4 + (4 << 20),
                             16 << 20), 48 << 20))

    inter, psum, tsum, ce_part = pl.pallas_call(
        kernel,
        out_shape=out_shapes,
        grid_spec=grid_spec,
        compiler_params=pltpu.CompilerParams(
            dimension_semantics=("parallel", "parallel", "arbitrary"),
            vmem_limit_bytes=vmem_limit),
    )(pred_k, tgt_k)

    # ---- tiny finalization in plain JAX (cross-lane reduce of (8,128) partials) ----
    inter = jnp.sum(inter.reshape(N, P, C, -1), axis=(1, 3))   # (N, C)
    psum = jnp.sum(psum.reshape(N, P, C, -1), axis=(1, 3))
    tsum = jnp.sum(tsum.reshape(N, P, C, -1), axis=(1, 3))
    ce_sum = jnp.sum(ce_part)
    n_valid_vox = jnp.sum(tsum)          # one-hot sums to 1 per valid voxel

    ce_loss = ce_sum / n_valid_vox
    dice = (2.0 * inter + smooth) / (psum + tsum + smooth)
    dice_loss = 1.0 - jnp.mean(dice)
    return alpha * ce_loss + (1.0 - alpha) * dice_loss


def _reference_loss(pred, target, alpha=ALPHA, ignore_index=IGNORE_INDEX,
                    smooth=SMOOTH):
    """Pure-JAX reference matching the PyTorch module."""
    C = pred.shape[1]
    logp = jax.nn.log_softmax(pred.astype(jnp.float32), axis=1)
    probs = jnp.exp(logp)
    onehot = jax.nn.one_hot(target, C, axis=1, dtype=jnp.float32)
    valid = (target != ignore_index).astype(jnp.float32)[:, None]
    ce_per = -jnp.sum(onehot * logp, axis=1, keepdims=True) * valid
    ce = jnp.sum(ce_per) / jnp.sum(valid)
    p_m = probs * valid
    t_m = onehot * valid
    inter = jnp.sum(p_m * t_m, axis=(2, 3, 4))
    union = jnp.sum(p_m, axis=(2, 3, 4)) + jnp.sum(t_m, axis=(2, 3, 4))
    dice = (2.0 * inter + smooth) / (union + smooth)
    return alpha * ce + (1.0 - alpha) * (1.0 - jnp.mean(dice))


def _check(key, shape_pred, shape_tgt, num_classes, **kwargs):
    k_pred, k_tgt = jax.random.split(key)
    pred = jax.random.normal(k_pred, shape_pred, dtype=jnp.float32)
    target = jax.random.randint(k_tgt, shape_tgt, 0, num_classes, dtype=jnp.int32)
    loss = jax.block_until_ready(combined_loss(pred, target, **kwargs))
    ref = jax.block_until_ready(_reference_loss(pred, target))
    assert jnp.isfinite(loss), "loss is not finite"
    assert jnp.allclose(loss, ref, rtol=1e-5, atol=1e-5), (loss, ref)


if __name__ == "__main__":
    key = jax.random.PRNGKey(0)
    k1, k2, k3 = jax.random.split(key, 3)

    # primary case: aligned spatial size (free re-layout, no masking)
    _check(k1, (2, 4, 4, 16, 16), (2, 4, 16, 16), 4)

    # ragged spatial size: exercises the minimal 128-pad + in-kernel tail masking
    _check(k2, (1, 3, 3, 7, 9), (1, 3, 7, 9), 3)

    # multi-tile accumulation + v7x-style spatial megacore split (N == 1)
    _check(k3, (1, 4, 4, 32, 32), (1, 4, 32, 32), 4, ts=1024)

    print("KERNEL_OK")
</pallas_src>

<mosaic_0001>
module attributes {stable_mosaic.version = 11 : i64} {
  func.func @_loss_stats_kernel(%arg0: i32, %arg1: i32, %arg2: i32, %arg3: memref<1x4x8x128xf32, #tpu.memory_space<vmem>>, %arg4: memref<1x1x8x128xi32, #tpu.memory_space<vmem>>, %arg5: memref<1x4x8x128xf32, #tpu.memory_space<vmem>>, %arg6: memref<1x4x8x128xf32, #tpu.memory_space<vmem>>, %arg7: memref<1x4x8x128xf32, #tpu.memory_space<vmem>>, %arg8: memref<1x1x8x128xf32, #tpu.memory_space<vmem>>) attributes {dimension_semantics = [#tpu.dimension_semantics<parallel>, #tpu.dimension_semantics<parallel>, #tpu.dimension_semantics<arbitrary>], iteration_bounds = array<i64: 2, 1, 1>, scalar_prefetch = 0 : i64, scratch_operands = 0 : i64, tpu.core_type = #tpu.core_type<tc>, window_params = [{transform_indices = @transform_0, window_bounds = array<i64: 1, 4, 8, 128>}, {transform_indices = @transform_1, window_bounds = array<i64: 1, 1, 8, 128>}, {transform_indices = @transform_2, window_bounds = array<i64: 1, 4, 8, 128>}, {transform_indices = @transform_3, window_bounds = array<i64: 1, 4, 8, 128>}, {transform_indices = @transform_4, window_bounds = array<i64: 1, 4, 8, 128>}, {transform_indices = @transform_5, window_bounds = array<i64: 1, 1, 8, 128>}]} {
    %c0_i32 = arith.constant 0 : i32
    %0 = arith.cmpi eq, %arg2, %c0_i32 : i32
    %1 = arith.extui %0 : i1 to i32
    %c0_i32_0 = arith.constant 0 : i32
    %2 = arith.cmpi ne, %1, %c0_i32_0 : i32
    scf.if %2 {
      %cst_136 = arith.constant 0.000000e+00 : f32
      %175 = vector.broadcast %cst_136 : f32 to vector<1x4x8x128xf32>
      %c0_137 = arith.constant 0 : index
      %c0_138 = arith.constant 0 : index
      %c0_139 = arith.constant 0 : index
      %c0_140 = arith.constant 0 : index
      %176 = vector.load %arg5[%c0_137, %c0_138, %c0_139, %c0_140] : memref<1x4x8x128xf32, #tpu.memory_space<vmem>>, vector<1x4x8x128xf32>
      tpu.vector_store %arg5[%c0_137, %c0_138, %c0_139, %c0_140], %175 {strides = array<i32>} : memref<1x4x8x128xf32, #tpu.memory_space<vmem>>, vector<1x4x8x128xf32>,
      %cst_141 = arith.constant 0.000000e+00 : f32
      %177 = vector.broadcast %cst_141 : f32 to vector<1x4x8x128xf32>
      %c0_142 = arith.constant 0 : index
      %c0_143 = arith.constant 0 : index
      %c0_144 = arith.constant 0 : index
      %c0_145 = arith.constant 0 : index
      %178 = vector.load %arg6[%c0_142, %c0_143, %c0_144, %c0_145] : memref<1x4x8x128xf32, #tpu.memory_space<vmem>>, vector<1x4x8x128xf32>
      tpu.vector_store %arg6[%c0_142, %c0_143, %c0_144, %c0_145], %177 {strides = array<i32>} : memref<1x4x8x128xf32, #tpu.memory_space<vmem>>, vector<1x4x8x128xf32>,
      %cst_146 = arith.constant 0.000000e+00 : f32
      %179 = vector.broadcast %cst_146 : f32 to vector<1x4x8x128xf32>
      %c0_147 = arith.constant 0 : index
      %c0_148 = arith.constant 0 : index
      %c0_149 = arith.constant 0 : index
      %c0_150 = arith.constant 0 : index
      %180 = vector.load %arg7[%c0_147, %c0_148, %c0_149, %c0_150] : memref<1x4x8x128xf32, #tpu.memory_space<vmem>>, vector<1x4x8x128xf32>
      tpu.vector_store %arg7[%c0_147, %c0_148, %c0_149, %c0_150], %179 {strides = array<i32>} : memref<1x4x8x128xf32, #tpu.memory_space<vmem>>, vector<1x4x8x128xf32>,
      %cst_151 = arith.constant 0.000000e+00 : f32
      %181 = vector.broadcast %cst_151 : f32 to vector<1x1x8x128xf32>
      %c0_152 = arith.constant 0 : index
      %c0_153 = arith.constant 0 : index
      %c0_154 = arith.constant 0 : index
      %c0_155 = arith.constant 0 : index
      %182 = vector.load %arg8[%c0_152, %c0_153, %c0_154, %c0_155] : memref<1x1x8x128xf32, #tpu.memory_space<vmem>>, vector<1x1x8x128xf32>
      tpu.vector_store %arg8[%c0_152, %c0_153, %c0_154, %c0_155], %181 {strides = array<i32>} : memref<1x1x8x128xf32, #tpu.memory_space<vmem>>, vector<1x1x8x128xf32>,
    } else {
    }
    %c0 = arith.constant 0 : index
    %c0_1 = arith.constant 0 : index
    %c0_2 = arith.constant 0 : index
    %c0_3 = arith.constant 0 : index
    %3 = vector.load %arg4[%c0, %c0_1, %c0_2, %c0_3] : memref<1x1x8x128xi32, #tpu.memory_space<vmem>>, vector<1x1x8x128xi32>
    %4 = vector.shape_cast %3 : vector<1x1x8x128xi32> to vector<8x128xi32>
    %c0_4 = arith.constant 0 : index
    %c0_5 = arith.constant 0 : index
    %c0_6 = arith.constant 0 : index
    %c0_7 = arith.constant 0 : index
    %5 = vector.load %arg3[%c0_4, %c0_5, %c0_6, %c0_7] : memref<1x4x8x128xf32, #tpu.memory_space<vmem>>, vector<1x1x8x128xf32>
    %6 = vector.shape_cast %5 : vector<1x1x8x128xf32> to vector<8x128xf32>
    %c0_8 = arith.constant 0 : index
    %c1 = arith.constant 1 : index
    %c0_9 = arith.constant 0 : index
    %c0_10 = arith.constant 0 : index
    %7 = vector.load %arg3[%c0_8, %c1, %c0_9, %c0_10] : memref<1x4x8x128xf32, #tpu.memory_space<vmem>>, vector<1x1x8x128xf32>
    %8 = vector.shape_cast %7 : vector<1x1x8x128xf32> to vector<8x128xf32>
    %c0_11 = arith.constant 0 : index
    %c2 = arith.constant 2 : index
    %c0_12 = arith.constant 0 : index
    %c0_13 = arith.constant 0 : index
    %9 = vector.load %arg3[%c0_11, %c2, %c0_12, %c0_13] : memref<1x4x8x128xf32, #tpu.memory_space<vmem>>, vector<1x1x8x128xf32>
    %10 = vector.shape_cast %9 : vector<1x1x8x128xf32> to vector<8x128xf32>
    %c0_14 = arith.constant 0 : index
    %c3 = arith.constant 3 : index
    %c0_15 = arith.constant 0 : index
    %c0_16 = arith.constant 0 : index
    %11 = vector.load %arg3[%c0_14, %c3, %c0_15, %c0_16] : memref<1x4x8x128xf32, #tpu.memory_space<vmem>>, vector<1x1x8x128xf32>
    %12 = vector.shape_cast %11 : vector<1x1x8x128xf32> to vector<8x128xf32>
    %c0_i32_17 = arith.constant 0 : i32
    %13 = vector.broadcast %c0_i32_17 : i32 to vector<8x128xi32>
    %14 = arith.cmpi ne, %4, %13 : vector<8x128xi32>
    %15 = arith.extui %14 : vector<8x128xi1> to vector<8x128xi32>
    %16 = arith.sitofp %15 : vector<8x128xi32> to vector<8x128xf32>
    %c-1_i32 = arith.constant -1 : i32
    %17 = vector.broadcast %c-1_i32 : i32 to vector<8x128xi32>
    %18 = arith.select %14, %4, %17 : vector<8x128xi1>, vector<8x128xi32>
    %19 = arith.maximumf %6, %8 : vector<8x128xf32>
    %20 = arith.maximumf %19, %10 : vector<8x128xf32>
    %21 = arith.maximumf %20, %12 : vector<8x128xf32>
    %22 = arith.subf %6, %21 : vector<8x128xf32>
    %23 = arith.subf %8, %21 : vector<8x128xf32>
    %24 = arith.subf %10, %21 : vector<8x128xf32>
    %25 = arith.subf %12, %21 : vector<8x128xf32>
    %26 = math.exp %22 : vector<8x128xf32>
    %27 = math.exp %23 : vector<8x128xf32>
    %28 = math.exp %24 : vector<8x128xf32>
    %29 = math.exp %25 : vector<8x128xf32>
    %30 = arith.addf %26, %27 : vector<8x128xf32>
    %31 = arith.addf %30, %28 : vector<8x128xf32>
    %32 = arith.addf %31, %29 : vector<8x128xf32>
    %33 = tpu.reciprocal %32 : vector<8x128xf32> -> vector<8x128xf32>
    %34 = arith.mulf %33, %16 : vector<8x128xf32>
    %cst = arith.constant 0.000000e+00 : f32
    %35 = vector.broadcast %cst : f32 to vector<8x128xf32>
    %c0_i32_18 = arith.constant 0 : i32
    %36 = vector.broadcast %c0_i32_18 : i32 to vector<8x128xi32>
    %37 = arith.cmpi eq, %18, %36 : vector<8x128xi32>
    %38 = arith.extui %37 : vector<8x128xi1> to vector<8x128xi32>
    %39 = arith.sitofp %38 : vector<8x128xi32> to vector<8x128xf32>
    %40 = arith.mulf %26, %34 : vector<8x128xf32>
    %41 = arith.mulf %39, %22 : vector<8x128xf32>
    %42 = arith.addf %35, %41 : vector<8x128xf32>
    %c0_19 = arith.constant 0 : index
    %c0_20 = arith.constant 0 : index
    %c0_21 = arith.constant 0 : index
    %c0_22 = arith.constant 0 : index
    %43 = vector.load %arg5[%c0_19, %c0_20, %c0_21, %c0_22] : memref<1x4x8x128xf32, #tpu.memory_space<vmem>>, vector<1x1x8x128xf32>
    %44 = vector.shape_cast %43 : vector<1x1x8x128xf32> to vector<8x128xf32>
    %45 = arith.mulf %40, %39 : vector<8x128xf32>
    %46 = vector.shape_cast %45 : vector<8x128xf32> to vector<1x8x128xf32>
    %cst_23 = arith.constant dense<0.000000e+00> : vector<8x128xf32>
    %47 = vector.multi_reduction <add>, %46, %cst_23 [0] : vector<1x8x128xf32> to vector<8x128xf32>
    %48 = arith.addf %44, %47 : vector<8x128xf32>
    %c0_24 = arith.constant 0 : index
    %c0_25 = arith.constant 0 : index
    %c0_26 = arith.constant 0 : index
    %c0_27 = arith.constant 0 : index
    %49 = vector.load %arg5[%c0_24, %c0_25, %c0_26, %c0_27] : memref<1x4x8x128xf32, #tpu.memory_space<vmem>>, vector<1x1x8x128xf32>
    %50 = vector.shape_cast %49 : vector<1x1x8x128xf32> to vector<8x128xf32>
    %51 = vector.shape_cast %48 : vector<8x128xf32> to vector<1x1x8x128xf32>
    tpu.vector_store %arg5[%c0_24, %c0_25, %c0_26, %c0_27], %51 {strides = array<i32>} : memref<1x4x8x128xf32, #tpu.memory_space<vmem>>, vector<1x1x8x128xf32>,
    %c0_28 = arith.constant 0 : index
    %c0_29 = arith.constant 0 : index
    %c0_30 = arith.constant 0 : index
    %c0_31 = arith.constant 0 : index
    %52 = vector.load %arg6[%c0_28, %c0_29, %c0_30, %c0_31] : memref<1x4x8x128xf32, #tpu.memory_space<vmem>>, vector<1x1x8x128xf32>
    %53 = vector.shape_cast %52 : vector<1x1x8x128xf32> to vector<8x128xf32>
    %54 = vector.shape_cast %40 : vector<8x128xf32> to vector<1x8x128xf32>
    %cst_32 = arith.constant dense<0.000000e+00> : vector<8x128xf32>
    %55 = vector.multi_reduction <add>, %54, %cst_32 [0] : vector<1x8x128xf32> to vector<8x128xf32>
    %56 = arith.addf %53, %55 : vector<8x128xf32>
    %c0_33 = arith.constant 0 : index
    %c0_34 = arith.constant 0 : index
    %c0_35 = arith.constant 0 : index
    %c0_36 = arith.constant 0 : index
    %57 = vector.load %arg6[%c0_33, %c0_34, %c0_35, %c0_36] : memref<1x4x8x128xf32, #tpu.memory_space<vmem>>, vector<1x1x8x128xf32>
    %58 = vector.shape_cast %57 : vector<1x1x8x128xf32> to vector<8x128xf32>
    %59 = vector.shape_cast %56 : vector<8x128xf32> to vector<1x1x8x128xf32>
    tpu.vector_store %arg6[%c0_33, %c0_34, %c0_35, %c0_36], %59 {strides = array<i32>} : memref<1x4x8x128xf32, #tpu.memory_space<vmem>>, vector<1x1x8x128xf32>,
    %c0_37 = arith.constant 0 : index
    %c0_38 = arith.constant 0 : index
    %c0_39 = arith.constant 0 : index
    %c0_40 = arith.constant 0 : index
    %60 = vector.load %arg7[%c0_37, %c0_38, %c0_39, %c0_40] : memref<1x4x8x128xf32, #tpu.memory_space<vmem>>, vector<1x1x8x128xf32>
    %61 = vector.shape_cast %60 : vector<1x1x8x128xf32> to vector<8x128xf32>
    %62 = vector.shape_cast %39 : vector<8x128xf32> to vector<1x8x128xf32>
    %cst_41 = arith.constant dense<0.000000e+00> : vector<8x128xf32>
    %63 = vector.multi_reduction <add>, %62, %cst_41 [0] : vector<1x8x128xf32> to vector<8x128xf32>
    %64 = arith.addf %61, %63 : vector<8x128xf32>
    %c0_42 = arith.constant 0 : index
    %c0_43 = arith.constant 0 : index
    %c0_44 = arith.constant 0 : index
    %c0_45 = arith.constant 0 : index
    %65 = vector.load %arg7[%c0_42, %c0_43, %c0_44, %c0_45] : memref<1x4x8x128xf32, #tpu.memory_space<vmem>>, vector<1x1x8x128xf32>
    %66 = vector.shape_cast %65 : vector<1x1x8x128xf32> to vector<8x128xf32>
    %67 = vector.shape_cast %64 : vector<8x128xf32> to vector<1x1x8x128xf32>
    tpu.vector_store %arg7[%c0_42, %c0_43, %c0_44, %c0_45], %67 {strides = array<i32>} : memref<1x4x8x128xf32, #tpu.memory_space<vmem>>, vector<1x1x8x128xf32>,
    %c1_i32 = arith.constant 1 : i32
    %68 = vector.broadcast %c1_i32 : i32 to vector<8x128xi32>
    %69 = arith.cmpi eq, %18, %68 : vector<8x128xi32>
    %70 = arith.extui %69 : vector<8x128xi1> to vector<8x128xi32>
    %71 = arith.sitofp %70 : vector<8x128xi32> to vector<8x128xf32>
    %72 = arith.mulf %27, %34 : vector<8x128xf32>
    %73 = arith.mulf %71, %23 : vector<8x128xf32>
    %74 = arith.addf %42, %73 : vector<8x128xf32>
    %c0_46 = arith.constant 0 : index
    %c1_47 = arith.constant 1 : index
    %c0_48 = arith.constant 0 : index
    %c0_49 = arith.constant 0 : index
    %75 = vector.load %arg5[%c0_46, %c1_47, %c0_48, %c0_49] : memref<1x4x8x128xf32, #tpu.memory_space<vmem>>, vector<1x1x8x128xf32>
    %76 = vector.shape_cast %75 : vector<1x1x8x128xf32> to vector<8x128xf32>
    %77 = arith.mulf %72, %71 : vector<8x128xf32>
    %78 = vector.shape_cast %77 : vector<8x128xf32> to vector<1x8x128xf32>
    %cst_50 = arith.constant dense<0.000000e+00> : vector<8x128xf32>
    %79 = vector.multi_reduction <add>, %78, %cst_50 [0] : vector<1x8x128xf32> to vector<8x128xf32>
    %80 = arith.addf %76, %79 : vector<8x128xf32>
    %c0_51 = arith.constant 0 : index
    %c1_52 = arith.constant 1 : index
    %c0_53 = arith.constant 0 : index
    %c0_54 = arith.constant 0 : index
    %81 = vector.load %arg5[%c0_51, %c1_52, %c0_53, %c0_54] : memref<1x4x8x128xf32, #tpu.memory_space<vmem>>, vector<1x1x8x128xf32>
    %82 = vector.shape_cast %81 : vector<1x1x8x128xf32> to vector<8x128xf32>
    %83 = vector.shape_cast %80 : vector<8x128xf32> to vector<1x1x8x128xf32>
    tpu.vector_store %arg5[%c0_51, %c1_52, %c0_53, %c0_54], %83 {strides = array<i32>} : memref<1x4x8x128xf32, #tpu.memory_space<vmem>>, vector<1x1x8x128xf32>,
    %c0_55 = arith.constant 0 : index
    %c1_56 = arith.constant 1 : index
    %c0_57 = arith.constant 0 : index
    %c0_58 = arith.constant 0 : index
    %84 = vector.load %arg6[%c0_55, %c1_56, %c0_57, %c0_58] : memref<1x4x8x128xf32, #tpu.memory_space<vmem>>, vector<1x1x8x128xf32>
    %85 = vector.shape_cast %84 : vector<1x1x8x128xf32> to vector<8x128xf32>
    %86 = vector.shape_cast %72 : vector<8x128xf32> to vector<1x8x128xf32>
    %cst_59 = arith.constant dense<0.000000e+00> : vector<8x128xf32>
    %87 = vector.multi_reduction <add>, %86, %cst_59 [0] : vector<1x8x128xf32> to vector<8x128xf32>
    %88 = arith.addf %85, %87 : vector<8x128xf32>
    %c0_60 = arith.constant 0 : index
    %c1_61 = arith.constant 1 : index
    %c0_62 = arith.constant 0 : index
    %c0_63 = arith.constant 0 : index
    %89 = vector.load %arg6[%c0_60, %c1_61, %c0_62, %c0_63] : memref<1x4x8x128xf32, #tpu.memory_space<vmem>>, vector<1x1x8x128xf32>
    %90 = vector.shape_cast %89 : vector<1x1x8x128xf32> to vector<8x128xf32>
    %91 = vector.shape_cast %88 : vector<8x128xf32> to vector<1x1x8x128xf32>
    tpu.vector_store %arg6[%c0_60, %c1_61, %c0_62, %c0_63], %91 {strides = array<i32>} : memref<1x4x8x128xf32, #tpu.memory_space<vmem>>, vector<1x1x8x128xf32>,
    %c0_64 = arith.constant 0 : index
    %c1_65 = arith.constant 1 : index
    %c0_66 = arith.constant 0 : index
    %c0_67 = arith.constant 0 : index
    %92 = vector.load %arg7[%c0_64, %c1_65, %c0_66, %c0_67] : memref<1x4x8x128xf32, #tpu.memory_space<vmem>>, vector<1x1x8x128xf32>
    %93 = vector.shape_cast %92 : vector<1x1x8x128xf32> to vector<8x128xf32>
    %94 = vector.shape_cast %71 : vector<8x128xf32> to vector<1x8x128xf32>
    %cst_68 = arith.constant dense<0.000000e+00> : vector<8x128xf32>
    %95 = vector.multi_reduction <add>, %94, %cst_68 [0] : vector<1x8x128xf32> to vector<8x128xf32>
    %96 = arith.addf %93, %95 : vector<8x128xf32>
    %c0_69 = arith.constant 0 : index
    %c1_70 = arith.constant 1 : index
    %c0_71 = arith.constant 0 : index
    %c0_72 = arith.constant 0 : index
    %97 = vector.load %arg7[%c0_69, %c1_70, %c0_71, %c0_72] : memref<1x4x8x128xf32, #tpu.memory_space<vmem>>, vector<1x1x8x128xf32>
    %98 = vector.shape_cast %97 : vector<1x1x8x128xf32> to vector<8x128xf32>
    %99 = vector.shape_cast %96 : vector<8x128xf32> to vector<1x1x8x128xf32>
    tpu.vector_store %arg7[%c0_69, %c1_70, %c0_71, %c0_72], %99 {strides = array<i32>} : memref<1x4x8x128xf32, #tpu.memory_space<vmem>>, vector<1x1x8x128xf32>,
    %c2_i32 = arith.constant 2 : i32
    %100 = vector.broadcast %c2_i32 : i32 to vector<8x128xi32>
    %101 = arith.cmpi eq, %18, %100 : vector<8x128xi32>
    %102 = arith.extui %101 : vector<8x128xi1> to vector<8x128xi32>
    %103 = arith.sitofp %102 : vector<8x128xi32> to vector<8x128xf32>
    %104 = arith.mulf %28, %34 : vector<8x128xf32>
    %105 = arith.mulf %103, %24 : vector<8x128xf32>
    %106 = arith.addf %74, %105 : vector<8x128xf32>
    %c0_73 = arith.constant 0 : index
    %c2_74 = arith.constant 2 : index
    %c0_75 = arith.constant 0 : index
    %c0_76 = arith.constant 0 : index
    %107 = vector.load %arg5[%c0_73, %c2_74, %c0_75, %c0_76] : memref<1x4x8x128xf32, #tpu.memory_space<vmem>>, vector<1x1x8x128xf32>
    %108 = vector.shape_cast %107 : vector<1x1x8x128xf32> to vector<8x128xf32>
    %109 = arith.mulf %104, %103 : vector<8x128xf32>
    %110 = vector.shape_cast %109 : vector<8x128xf32> to vector<1x8x128xf32>
    %cst_77 = arith.constant dense<0.000000e+00> : vector<8x128xf32>
    %111 = vector.multi_reduction <add>, %110, %cst_77 [0] : vector<1x8x128xf32> to vector<8x128xf32>
    %112 = arith.addf %108, %111 : vector<8x128xf32>
    %c0_78 = arith.constant 0 : index
    %c2_79 = arith.constant 2 : index
    %c0_80 = arith.constant 0 : index
    %c0_81 = arith.constant 0 : index
    %113 = vector.load %arg5[%c0_78, %c2_79, %c0_80, %c0_81] : memref<1x4x8x128xf32, #tpu.memory_space<vmem>>, vector<1x1x8x128xf32>
    %114 = vector.shape_cast %113 : vector<1x1x8x128xf32> to vector<8x128xf32>
    %115 = vector.shape_cast %112 : vector<8x128xf32> to vector<1x1x8x128xf32>
    tpu.vector_store %arg5[%c0_78, %c2_79, %c0_80, %c0_81], %115 {strides = array<i32>} : memref<1x4x8x128xf32, #tpu.memory_space<vmem>>, vector<1x1x8x128xf32>,
    %c0_82 = arith.constant 0 : index
    %c2_83 = arith.constant 2 : index
    %c0_84 = arith.constant 0 : index
    %c0_85 = arith.constant 0 : index
    %116 = vector.load %arg6[%c0_82, %c2_83, %c0_84, %c0_85] : memref<1x4x8x128xf32, #tpu.memory_space<vmem>>, vector<1x1x8x128xf32>
    %117 = vector.shape_cast %116 : vector<1x1x8x128xf32> to vector<8x128xf32>
    %118 = vector.shape_cast %104 : vector<8x128xf32> to vector<1x8x128xf32>
    %cst_86 = arith.constant dense<0.000000e+00> : vector<8x128xf32>
    %119 = vector.multi_reduction <add>, %118, %cst_86 [0] : vector<1x8x128xf32> to vector<8x128xf32>
    %120 = arith.addf %117, %119 : vector<8x128xf32>
    %c0_87 = arith.constant 0 : index
    %c2_88 = arith.constant 2 : index
    %c0_89 = arith.constant 0 : index
    %c0_90 = arith.constant 0 : index
    %121 = vector.load %arg6[%c0_87, %c2_88, %c0_89, %c0_90] : memref<1x4x8x128xf32, #tpu.memory_space<vmem>>, vector<1x1x8x128xf32>
    %122 = vector.shape_cast %121 : vector<1x1x8x128xf32> to vector<8x128xf32>
    %123 = vector.shape_cast %120 : vector<8x128xf32> to vector<1x1x8x128xf32>
    tpu.vector_store %arg6[%c0_87, %c2_88, %c0_89, %c0_90], %123 {strides = array<i32>} : memref<1x4x8x128xf32, #tpu.memory_space<vmem>>, vector<1x1x8x128xf32>,
    %c0_91 = arith.constant 0 : index
    %c2_92 = arith.constant 2 : index
    %c0_93 = arith.constant 0 : index
    %c0_94 = arith.constant 0 : index
    %124 = vector.load %arg7[%c0_91, %c2_92, %c0_93, %c0_94] : memref<1x4x8x128xf32, #tpu.memory_space<vmem>>, vector<1x1x8x128xf32>
    %125 = vector.shape_cast %124 : vector<1x1x8x128xf32> to vector<8x128xf32>
    %126 = vector.shape_cast %103 : vector<8x128xf32> to vector<1x8x128xf32>
    %cst_95 = arith.constant dense<0.000000e+00> : vector<8x128xf32>
    %127 = vector.multi_reduction <add>, %126, %cst_95 [0] : vector<1x8x128xf32> to vector<8x128xf32>
    %128 = arith.addf %125, %127 : vector<8x128xf32>
    %c0_96 = arith.constant 0 : index
    %c2_97 = arith.constant 2 : index
    %c0_98 = arith.constant 0 : index
    %c0_99 = arith.constant 0 : index
    %129 = vector.load %arg7[%c0_96, %c2_97, %c0_98, %c0_99] : memref<1x4x8x128xf32, #tpu.memory_space<vmem>>, vector<1x1x8x128xf32>
    %130 = vector.shape_cast %129 : vector<1x1x8x128xf32> to vector<8x128xf32>
    %131 = vector.shape_cast %128 : vector<8x128xf32> to vector<1x1x8x128xf32>
    tpu.vector_store %arg7[%c0_96, %c2_97, %c0_98, %c0_99], %131 {strides = array<i32>} : memref<1x4x8x128xf32, #tpu.memory_space<vmem>>, vector<1x1x8x128xf32>,
    %c3_i32 = arith.constant 3 : i32
    %132 = vector.broadcast %c3_i32 : i32 to vector<8x128xi32>
    %133 = arith.cmpi eq, %18, %132 : vector<8x128xi32>
    %134 = arith.extui %133 : vector<8x128xi1> to vector<8x128xi32>
    %135 = arith.sitofp %134 : vector<8x128xi32> to vector<8x128xf32>
    %136 = arith.mulf %29, %34 : vector<8x128xf32>
    %137 = arith.mulf %135, %25 : vector<8x128xf32>
    %138 = arith.addf %106, %137 : vector<8x128xf32>
    %c0_100 = arith.constant 0 : index
    %c3_101 = arith.constant 3 : index
    %c0_102 = arith.constant 0 : index
    %c0_103 = arith.constant 0 : index
    %139 = vector.load %arg5[%c0_100, %c3_101, %c0_102, %c0_103] : memref<1x4x8x128xf32, #tpu.memory_space<vmem>>, vector<1x1x8x128xf32>
    %140 = vector.shape_cast %139 : vector<1x1x8x128xf32> to vector<8x128xf32>
    %141 = arith.mulf %136, %135 : vector<8x128xf32>
    %142 = vector.shape_cast %141 : vector<8x128xf32> to vector<1x8x128xf32>
    %cst_104 = arith.constant dense<0.000000e+00> : vector<8x128xf32>
    %143 = vector.multi_reduction <add>, %142, %cst_104 [0] : vector<1x8x128xf32> to vector<8x128xf32>
    %144 = arith.addf %140, %143 : vector<8x128xf32>
    %c0_105 = arith.constant 0 : index
    %c3_106 = arith.constant 3 : index
    %c0_107 = arith.constant 0 : index
    %c0_108 = arith.constant 0 : index
    %145 = vector.load %arg5[%c0_105, %c3_106, %c0_107, %c0_108] : memref<1x4x8x128xf32, #tpu.memory_space<vmem>>, vector<1x1x8x128xf32>
    %146 = vector.shape_cast %145 : vector<1x1x8x128xf32> to vector<8x128xf32>
    %147 = vector.shape_cast %144 : vector<8x128xf32> to vector<1x1x8x128xf32>
    tpu.vector_store %arg5[%c0_105, %c3_106, %c0_107, %c0_108], %147 {strides = array<i32>} : memref<1x4x8x128xf32, #tpu.memory_space<vmem>>, vector<1x1x8x128xf32>,
    %c0_109 = arith.constant 0 : index
    %c3_110 = arith.constant 3 : index
    %c0_111 = arith.constant 0 : index
    %c0_112 = arith.constant 0 : index
    %148 = vector.load %arg6[%c0_109, %c3_110, %c0_111, %c0_112] : memref<1x4x8x128xf32, #tpu.memory_space<vmem>>, vector<1x1x8x128xf32>
    %149 = vector.shape_cast %148 : vector<1x1x8x128xf32> to vector<8x128xf32>
    %150 = vector.shape_cast %136 : vector<8x128xf32> to vector<1x8x128xf32>
    %cst_113 = arith.constant dense<0.000000e+00> : vector<8x128xf32>
    %151 = vector.multi_reduction <add>, %150, %cst_113 [0] : vector<1x8x128xf32> to vector<8x128xf32>
    %152 = arith.addf %149, %151 : vector<8x128xf32>
    %c0_114 = arith.constant 0 : index
    %c3_115 = arith.constant 3 : index
    %c0_116 = arith.constant 0 : index
    %c0_117 = arith.constant 0 : index
    %153 = vector.load %arg6[%c0_114, %c3_115, %c0_116, %c0_117] : memref<1x4x8x128xf32, #tpu.memory_space<vmem>>, vector<1x1x8x128xf32>
    %154 = vector.shape_cast %153 : vector<1x1x8x128xf32> to vector<8x128xf32>
    %155 = vector.shape_cast %152 : vector<8x128xf32> to vector<1x1x8x128xf32>
    tpu.vector_store %arg6[%c0_114, %c3_115, %c0_116, %c0_117], %155 {strides = array<i32>} : memref<1x4x8x128xf32, #tpu.memory_space<vmem>>, vector<1x1x8x128xf32>,
    %c0_118 = arith.constant 0 : index
    %c3_119 = arith.constant 3 : index
    %c0_120 = arith.constant 0 : index
    %c0_121 = arith.constant 0 : index
    %156 = vector.load %arg7[%c0_118, %c3_119, %c0_120, %c0_121] : memref<1x4x8x128xf32, #tpu.memory_space<vmem>>, vector<1x1x8x128xf32>
    %157 = vector.shape_cast %156 : vector<1x1x8x128xf32> to vector<8x128xf32>
    %158 = vector.shape_cast %135 : vector<8x128xf32> to vector<1x8x128xf32>
    %cst_122 = arith.constant dense<0.000000e+00> : vector<8x128xf32>
    %159 = vector.multi_reduction <add>, %158, %cst_122 [0] : vector<1x8x128xf32> to vector<8x128xf32>
    %160 = arith.addf %157, %159 : vector<8x128xf32>
    %c0_123 = arith.constant 0 : index
    %c3_124 = arith.constant 3 : index
    %c0_125 = arith.constant 0 : index
    %c0_126 = arith.constant 0 : index
    %161 = vector.load %arg7[%c0_123, %c3_124, %c0_125, %c0_126] : memref<1x4x8x128xf32, #tpu.memory_space<vmem>>, vector<1x1x8x128xf32>
    %162 = vector.shape_cast %161 : vector<1x1x8x128xf32> to vector<8x128xf32>
    %163 = vector.shape_cast %160 : vector<8x128xf32> to vector<1x1x8x128xf32>
    tpu.vector_store %arg7[%c0_123, %c3_124, %c0_125, %c0_126], %163 {strides = array<i32>} : memref<1x4x8x128xf32, #tpu.memory_space<vmem>>, vector<1x1x8x128xf32>,
    %164 = math.log %32 : vector<8x128xf32>
    %165 = arith.subf %164, %138 : vector<8x128xf32>
    %166 = arith.mulf %165, %16 : vector<8x128xf32>
    %c0_127 = arith.constant 0 : index
    %c0_128 = arith.constant 0 : index
    %c0_129 = arith.constant 0 : index
    %c0_130 = arith.constant 0 : index
    %167 = vector.load %arg8[%c0_127, %c0_128, %c0_129, %c0_130] : memref<1x1x8x128xf32, #tpu.memory_space<vmem>>, vector<1x1x8x128xf32>
    %168 = vector.shape_cast %167 : vector<1x1x8x128xf32> to vector<8x128xf32>
    %169 = vector.shape_cast %166 : vector<8x128xf32> to vector<1x8x128xf32>
    %cst_131 = arith.constant dense<0.000000e+00> : vector<8x128xf32>
    %170 = vector.multi_reduction <add>, %169, %cst_131 [0] : vector<1x8x128xf32> to vector<8x128xf32>
    %171 = arith.addf %168, %170 : vector<8x128xf32>
    %c0_132 = arith.constant 0 : index
    %c0_133 = arith.constant 0 : index
    %c0_134 = arith.constant 0 : index
    %c0_135 = arith.constant 0 : index
    %172 = vector.load %arg8[%c0_132, %c0_133, %c0_134, %c0_135] : memref<1x1x8x128xf32, #tpu.memory_space<vmem>>, vector<1x1x8x128xf32>
    %173 = vector.shape_cast %172 : vector<1x1x8x128xf32> to vector<8x128xf32>
    %174 = vector.shape_cast %171 : vector<8x128xf32> to vector<1x1x8x128xf32>
    tpu.vector_store %arg8[%c0_132, %c0_133, %c0_134, %c0_135], %174 {strides = array<i32>} : memref<1x1x8x128xf32, #tpu.memory_space<vmem>>, vector<1x1x8x128xf32>,
    return
  }
  func.func @transform_0(%arg0: i32, %arg1: i32, %arg2: i32) -> (i32, i32, i32, i32) {
    %c1_i32 = arith.constant 1 : i32
    %0 = arith.muli %arg1, %c1_i32 : i32
    %1 = arith.addi %0, %arg2 : i32
    %c0_i32 = arith.constant 0 : i32
    %c0_i32_0 = arith.constant 0 : i32
    %c0_i32_1 = arith.constant 0 : i32
    return %arg0, %c0_i32, %1, %c0_i32_0 : i32, i32, i32, i32
  }
  func.func @transform_1(%arg0: i32, %arg1: i32, %arg2: i32) -> (i32, i32, i32, i32) {
    %c1_i32 = arith.constant 1 : i32
    %0 = arith.muli %arg1, %c1_i32 : i32
    %1 = arith.addi %0, %arg2 : i32
    %c0_i32 = arith.constant 0 : i32
    %c0_i32_0 = arith.constant 0 : i32
    %c0_i32_1 = arith.constant 0 : i32
    return %arg0, %c0_i32, %1, %c0_i32_0 : i32, i32, i32, i32
  }
  func.func @transform_2(%arg0: i32, %arg1: i32, %arg2: i32) -> (i32, i32, i32, i32) {
    %c1_i32 = arith.constant 1 : i32
    %0 = arith.muli %arg0, %c1_i32 : i32
    %1 = arith.addi %0, %arg1 : i32
    %c0_i32 = arith.constant 0 : i32
    %c0_i32_0 = arith.constant 0 : i32
    %c0_i32_1 = arith.constant 0 : i32
    %c0_i32_2 = arith.constant 0 : i32
    return %1, %c0_i32, %c0_i32_0, %c0_i32_1 : i32, i32, i32, i32
  }
  func.func @transform_3(%arg0: i32, %arg1: i32, %arg2: i32) -> (i32, i32, i32, i32) {
    %c1_i32 = arith.constant 1 : i32
    %0 = arith.muli %arg0, %c1_i32 : i32
    %1 = arith.addi %0, %arg1 : i32
    %c0_i32 = arith.constant 0 : i32
    %c0_i32_0 = arith.constant 0 : i32
    %c0_i32_1 = arith.constant 0 : i32
    %c0_i32_2 = arith.constant 0 : i32
    return %1, %c0_i32, %c0_i32_0, %c0_i32_1 : i32, i32, i32, i32
  }
  func.func @transform_4(%arg0: i32, %arg1: i32, %arg2: i32) -> (i32, i32, i32, i32) {
    %c1_i32 = arith.constant 1 : i32
    %0 = arith.muli %arg0, %c1_i32 : i32
    %1 = arith.addi %0, %arg1 : i32
    %c0_i32 = arith.constant 0 : i32
    %c0_i32_0 = arith.constant 0 : i32
    %c0_i32_1 = arith.constant 0 : i32
    %c0_i32_2 = arith.constant 0 : i32
    return %1, %c0_i32, %c0_i32_0, %c0_i32_1 : i32, i32, i32, i32
  }
  func.func @transform_5(%arg0: i32, %arg1: i32, %arg2: i32) -> (i32, i32, i32, i32) {
    %c1_i32 = arith.constant 1 : i32
    %0 = arith.muli %arg0, %c1_i32 : i32
    %1 = arith.addi %0, %arg1 : i32
    %c0_i32 = arith.constant 0 : i32
    %c0_i32_0 = arith.constant 0 : i32
    %c0_i32_1 = arith.constant 0 : i32
    %c0_i32_2 = arith.constant 0 : i32
    return %1, %c0_i32, %c0_i32_0, %c0_i32_1 : i32, i32, i32, i32
  }
}

</mosaic_0001>

<bundles_post_ra>
// kernel: tpu_custom_call.1
= control target key start
LH: loop header
LB: loop body
LE: loop exit
PB: predicated region body
PF: predicated region fallthrough
CT: control target
= control target key end

     0   :  { %s1542_s0 = inlined_call_operand.hbm [shape: f32[2,4,8,128], index: 0, kind: input, shape index: {}]   ;;  %s1543_s1 = inlined_call_operand.hbm [shape: s32[2,1,8,128], index: 1, kind: input, shape index: {}]   ;;  %s1544_s2 = inlined_call_operand.hbm [shape: f32[2,4,8,128], index: 2, kind: output, shape index: {0}]   ;;  %s1545_s3 = inlined_call_operand.hbm [shape: f32[2,4,8,128], index: 3, kind: output, shape index: {1}]   ;;  %s1546_s4 = inlined_call_operand.hbm [shape: f32[2,4,8,128], index: 4, kind: output, shape index: {2}]   ;;  %s1547_s5 = inlined_call_operand.hbm [shape: f32[2,1,8,128], index: 5, kind: output, shape index: {3}]  }
   0x1   :  { %1551 = sst [smem:[#allocation21_spill]] %s1542_s0 }
   0x2   :  { %1552 = sst [smem:[#allocation22_spill]] %s1543_s1 }
   0x3   :  { %11 = vsyncpa [#allocation3], 0 }
   0x4   :  { %13 = vsyncpa [#allocation3 + $0x1], 0 }
   0x5   :  { %14 = vsyncpa [#allocation6], 0 }
   0x6   :  { %16 = vsyncpa [#allocation6 + $0x1], 0 }
   0x7   :  { %17 = vsyncpa [#allocation4], 0 }
   0x8   :  { %19 = vsyncpa [#allocation4 + $0x1], 0 }
   0x9   :  { %20 = vsyncpa [#allocation9], 0 }
   0xa   :  { %22 = vsyncpa [#allocation9 + $0x1], 0 }
   0xb   :  { %23 = vsyncpa [#allocation12], 0 }
   0xc   :  { %25 = vsyncpa [#allocation12 + $0x1], 0  ;;  %s1209_s18 = smov 0   ;;  %s1211_s19 = smov 0  }
   0xd   :  { %s1213_s20 = smov 0   ;;  %s1215_s21 = smov 0  }
   0xe   :  { %s1217_s22 = smov 0   ;;  %s1219_s23 = smov 0  }
   0xf LB: > { %1553 = sst [smem:[#allocation18_spill]] %s1154_s20  ;;  %s1240_s24 = sadd.s32 4294967295, %s1166_s23   ;;  %s1166_s23 = sphi %s1219_s23, %s31_s23   ;;  %s1162_s22 = sphi %s1217_s22, %s1571_s22   ;;  %s1158_s21 = sphi %s1215_s21, %s1570_s21   ;;  %s1154_s20 = sphi %s1213_s20, %s1566_s20   ;;  %s1150_s19 = sphi %s1211_s19, %s1569_s19   ;;  %s1146_s18 = sphi %s1209_s18, %s1568_s18  }
  0x10   : > { %s1548_s25 = sadd.s32 4294967294, %s1166_s23   ;;  %s50_s26 = sadd.s32 1, %s1162_s22 }
  0x11   : > { %s61_s27 = sadd.s32 1, %s1154_s20  ;;  %p52_p0 = scmp.ge.s32.totalorder %s50_s26, 2 }
  0x12   : > { %p68_p1 = scmp.ne.s32.totalorder %s1154_s20, %s1150_s19  ;;  %p69_p2 = scmp.eq.s32.totalorder %s1166_s23, 0 }
  0x13   : > { %p74_p3 = scmp.ne.s32.totalorder %s1150_s19, %s1146_s18  ;;  %s1573_s26 = smov (%p52_p0, %s50_s26), 0 }
  0x14   : > { %1554 = sst [smem:[#allocation19_spill]] %s1573_s26  ;;  %p1252_p4 = por %p69_p2, %p68_p1 }
  0x15   : > { %p75_p5 = scmp.eq.s32.totalorder %s1240_s24, 0  ;;  %s56_s29 = ssub.s32 %s1162_s22, %s1573_s26 }
  0x16   : > { %p130_p6 = scmp.eq.s32.totalorder %s1240_s24, 1  ;;  %p59_p7 = scmp.eq.s32.totalorder %s56_s29, 0 }
  0x17   : > { %p1260_p8 = por %p75_p5, %p74_p3  ;;  %p136_p10 = scmp.eq.s32.totalorder %s1548_s25, 1 }
  0x18   : > { %p1264_p9 = por %p130_p6, %p68_p1  ;;  %p785_p12 = scmp.ge.s32.totalorder %s1166_s23, 2 }
  0x19   : > { %s1271_s7 = scalar_select %p59_p7, %s1154_s20, %s61_s27  }
  0x1a   : > { %p1273_p11 = por %p136_p10, %p74_p3  ;;  %p873_p13 = scmp.lt.s32.totalorder %s1166_s23, 2 }
  0x1b   : > { %1558 = sst [smem:[#allocation20_spill]] %s1271_s7  ;;  %s1280_s9 = sand.u32 1, %s1154_s20  }
  0x1c   : > { %s786_s10 = sshll.u32 %s1280_s9, 5  ;;  %s837_s11 = sshll.u32 %s1162_s22, 9 }
  0x1d   : > { %s1560_s0 = sld [smem:[#allocation21_spill]]  ;;  %s244_s15 = scalar_lea.vmem [#allocation2], %s786_s10 }
  0x1e   : > { %s253_s16 = sshll.u32 %s244_s15, 4  ;;  %p1289_p0 = pnand %p873_p13, %p1252_p4  ;;  %s254_s16 = int_to_ptr.vmem [resolvable:$true] %s253_s16 }
  0x1f   : > { %p791_p1 = scmp.ge.s32.totalorder %s1166_s23, 1  ;;  %s241_s27 = scalar_lea.sflag [#allocation3], %s1280_s9 }
  0x20   : > { %p942_p2 = pneg %p1289_p0  ;;  %s953_s29 = scalar_lea.vmem %s254_s16, 512 }
  0x21   : > { %p954_p3 = scmp.ne.s32.totalorder %s254_s16, %s953_s29  ;;  %s1168_s10 = smov [#allocation2]  }
  0x23   : > { %s252_s14 = scalar_lea.hbm %s1560_s0, %s837_s11  ;;  %p956_p5 = pnand %p954_p3, %p942_p2 }
  0x24   : > { %s958_s11 = sshll.u32 %s1168_s10, 4  ;;  %s959_s11 = int_to_ptr.vmem [resolvable:$false] %s958_s11 }
  0x25   : > { %p957_p6 = pneg %p956_p5  ;;  %s960_s28 = scalar_lea.vmem %s959_s11, 1024 }
  0x26   : > { %p961_p4 = scmp.lt.s32.totalorder %s254_s16, %s959_s11  ;;  %p962_p7 = scmp.lt.s32.totalorder %s960_s28, %s953_s29 }
  0x28   : > { %p963_p10 = por %p962_p7, %p961_p4 }
  0x2a   : > { %p964_p13 = pnand %p963_p10, %p957_p6 }
  0x2c   : > { %967 = shalt.err (!%p964_p13)
}
  0x2d   : > { %s1169_s12 = smov 128   ;;  %s1170_s13 = smov 8  }
  0x2e   : > { %856 = dma.hbm_to_vmem [thread:$0]  (!%p1289_p0), %s252_s14, 512, %s254_s16, %s241_s27, %s1169_s12, %s1169_s12, %s1170_s13  }
  0x2f   : > { %p281_p3 = scmp.lt.s32.totalorder %s1166_s23, 3  ;;  %s789_s15 = sshll.u32 %s1280_s9, 3 }
  0x30   : > { %s790_s10 = sshll.u32 %s1162_s22, 7  ;;  %s1563_s1 = sld [smem:[#allocation22_spill]] }
  0x31   : > { %p1307_p5 = pnand %p791_p1, %p281_p3  ;;  %s267_s0 = scalar_lea.vmem [#allocation5], %s789_s15 }
  0x32   : > { %s276_s26 = sshll.u32 %s267_s0, 4  ;;  %s264_s7 = scalar_lea.sflag [#allocation6], %s1280_s9  ;;  %s277_s26 = int_to_ptr.vmem [resolvable:$true] %s276_s26 }
  0x33   : > { %s981_s20 = scalar_lea.vmem %s277_s26, 128  ;;  %s1171_s14 = smov [#allocation5]  }
  0x34   : > { %p982_p6 = scmp.ne.s32.totalorder %s277_s26, %s981_s20  ;;  %s986_s16 = sshll.u32 %s1171_s14, 4  ;;  %s987_s16 = int_to_ptr.vmem [resolvable:$false] %s986_s16 }
  0x35   : > { %s988_s27 = scalar_lea.vmem %s987_s16, 256  ;;  %p989_p1 = scmp.lt.s32.totalorder %s277_s26, %s987_s16 }
  0x36   : > { %s274_s25 = scalar_lea.hbm %s1563_s1, %s790_s10  ;;  %p984_p4 = pnand %p982_p6, %p942_p2 }
  0x37   : > { %p990_p10 = scmp.lt.s32.totalorder %s988_s27, %s981_s20 }
  0x38   : > { %p985_p7 = pneg %p984_p4 }
  0x39   : > { %p991_p13 = por %p990_p10, %p989_p1 }
  0x3b   : > { %p992_p3 = pnand %p991_p13, %p985_p7 }
  0x3d   : > { %995 = shalt.err (!%p992_p3)
}
  0x3e   : > { %859 = dma.hbm_to_vmem [thread:$0]  (!%p1289_p0), %s274_s25, 128, %s277_s26, %s264_s7  }
  0x3f   : > { %285 = sbr.rel (%p1307_p5) target bundleno = 210 (0xd2), region = 28  ;;  %s1323_s0 = sand.u32 (!%p1307_p5), 1, %s1150_s19  }
  0x40   : > { %s1326_s9 = sshll.u32 (!%p1307_p5), %s1323_s0, 5  ;;  %s288_s12 = scalar_lea.sflag (!%p1307_p5), [#allocation3], %s1323_s0 }
  0x41   : > { %s291_s20 = scalar_lea.vmem (!%p1307_p5), [#allocation2], %s1326_s9 }
  0x44   : > { %1125 = dma.done.wait (%p1260_p8), %s288_s12, 512  }
  0x45   : > { %1127 = vsyncadd (%p1260_p8), %s288_s12, 4294966784  ;;  %s793_s25 = sshll.u32 %s1323_s0, 3  ;;  %s297_s26 = scalar_lea.sflag [#allocation6], %s1323_s0 }
  0x46   : > { %s300_s7 = scalar_lea.vmem [#allocation5], %s793_s25 }
  0x47   : > { %1129 = dma.done.wait (%p1260_p8), %s297_s26, 128  }
  0x48   : > { %1131 = vsyncadd (%p1260_p8), %s297_s26, 4294967168  ;;  %v370_v0 = vld [vmem:[%s300_s7] sm:$0xff]  ;;  %v799_v3 = vld [vmem:[%s291_s20 + $0x10] sm:$0xff]  ;;  %v1172_v8 = vmov 0.0   ;;  %s1350_s30 = scalar_lea.vmem [#allocation10], %s1326_s9  ;;  %s500_s17 = sand.u32 1, %s1240_s24  }
  0x49   : > { %v371_v1 = vld [vmem:[%s291_s20] sm:$0xff]  ;;  %v798_v2 = vld [vmem:[%s291_s20 + $0x8] sm:$0xff]  ;;  %vm378_vm0 = vcmp.ne.s32.totalorder %v370_v0, 0  ;;  %v800_v5 = vld [vmem:[%s291_s20 + $0x18] sm:$0xff]  ;;  %s838_s13 = sshll.u32 %s1158_s21, 9  ;;  %s1366_s15 = scalar_lea.vmem [#allocation8], %s1326_s9 }
  0x4a   : > { %v382_v4 = vmax.f32 %v371_v1, %v798_v2  ;;  %v381_v6 = vsel %vm378_vm0, %v370_v0, 4294967295  ;;  %v801_v35 = vsel %vm378_vm0, 1.0, %v1172_v8  ;;  %s542_s10 = sshll.u32 %s1366_s15, 4  ;;  %s1372_s28 = scalar_lea.hbm %s1545_s3, %s838_s13  ;;  %s1379_s10 = int_to_ptr.vmem [resolvable:$true] %s542_s10 }
  0x4b   : > { %vm402_vm1 = vcmp.eq.s32.totalorder %v381_v6, 0  ;;  %vm421_vm2 = vcmp.eq.s32.totalorder %v381_v6, 1  ;;  %vm443_vm3 = vcmp.eq.s32.totalorder %v381_v6, 2  ;;  %vm465_vm4 = vcmp.eq.s32.totalorder %v381_v6, 3  ;;  %s1377_s27 = scalar_lea.hbm %s1546_s4, %s838_s13  ;;  %s1382_s12 = scalar_lea.vmem [#allocation7], %s1326_s9 }
  0x4c   : > { %v383_v7 = vmax.f32 %v382_v4, %v799_v3  ;;  %v1343_v9 = vsel %vm402_vm1, 1.0, %v1172_v8  ;;  %v1345_v10 = vsel %vm421_vm2, 1.0, %v1172_v8  ;;  %v1347_v11 = vsel %vm443_vm3, 1.0, %v1172_v8  ;;  %s525_s20 = sshll.u32 %s1382_s12, 4  ;;  %s559_s26 = sshll.u32 %s1350_s30, 4  ;;  %s1397_s20 = int_to_ptr.vmem [resolvable:$true] %s525_s20  ;;  %s1402_s26 = int_to_ptr.vmem [resolvable:$true] %s559_s26 }
  0x4d   : > { %v817_v13 = vsel %vm465_vm4, 1.0, %v1172_v8  ;;  %420 = vst [vmem:[%s1350_s30] sm:$0xff] %v1343_v9  ;;  %809 = vst [vmem:[%s1350_s30 + $0x8] sm:$0xff] %v1345_v10  ;;  %s834_s7 = sshll.u32 %s1158_s21, 7  ;;  %s1389_s29 = scalar_lea.vmem [#allocation11], %s793_s25 }
  0x4e   : > { %v384_v12 = vmax.f32 %v383_v7, %v800_v5  ;;  %816 = vst [vmem:[%s1350_s30 + $0x10] sm:$0xff] %v1347_v11  ;;  %823 = vst [vmem:[%s1350_s30 + $0x18] sm:$0xff] %v817_v13  ;;  %s576_s9 = sshll.u32 %s1389_s29, 4  ;;  %s1395_s16 = scalar_lea.hbm %s1544_s2, %s838_s13  ;;  %s1413_s9 = int_to_ptr.vmem [resolvable:$true] %s576_s9 }
  0x4f   : > { %s1411_s30 = scalar_lea.hbm %s1547_s5, %s834_s7  ;;  %s1417_s13 = scalar_lea.sflag [#allocation9], %s500_s17 }
  0x50   : > { %v385_v14 = vsub.f32 %v371_v1, %v384_v12  ;;  %v386_v15 = vsub.f32 %v798_v2, %v384_v12  ;;  %v387_v16 = vsub.f32 %v799_v3, %v384_v12  ;;  %v388_v17 = vsub.f32 %v800_v5, %v384_v12  ;;  %s996_s11 = scalar_lea.vmem %s1379_s10, 512  ;;  %s1173_s14 = smov [#allocation8]  }
  0x51   : > { %p997_p8 = scmp.ne.s32.totalorder %s1379_s10, %s996_s11  ;;  %s1000_s1 = sshll.u32 %s1173_s14, 4  ;;  %s1001_s1 = int_to_ptr.vmem [resolvable:$false] %s1000_s1 }
  0x52   : > { %v389_v18 = vmul.f32 1.442695, %v385_v14  ;;  %v391_v19 = vmul.f32 1.442695, %v386_v15  ;;  %v393_v20 = vmul.f32 1.442695, %v387_v16  ;;  %v406_v29 = vmul.f32 %v1343_v9, %v385_v14  ;;  %p1003_p5 = scmp.lt.s32.totalorder %s1379_s10, %s1001_s1 }
  0x53   : > { %v395_v21 = vmul.f32 1.442695, %v388_v17  ;;  %v425_v30 = vmul.f32 %v1345_v10, %v386_v15  ;;  %v447_v32 = vmul.f32 %v1347_v11, %v387_v16  ;;  %v469_v33 = vmul.f32 %v817_v13, %v388_v17  ;;  %p998_p0 = pnand %p997_p8, %p1264_p9 }
  0x54   : > { %928 = vpow2.f32 %v389_v18 }
  0x55   : > { %930 = vpow2.f32 %v391_v19  ;;  %v426_v31 = vadd.f32 %v425_v30, %v406_v29  ;;  %p999_p2 = pneg %p998_p0 }
  0x56   : > { %932 = vpow2.f32 %v393_v20 }
  0x57   : > { %934 = vpow2.f32 %v395_v21  ;;  %v448_v34 = vadd.f32 %v447_v32, %v426_v31 }
  0x59   : > { %v470_v37 = vadd.f32 %v469_v33, %v448_v34 }
  0x61   : > { %v929_v22 = vpop.eup %928 }
  0x62   : > { %v931_v23 = vpop.eup %930 }
  0x63   : > { %v933_v24 = vpop.eup %932  ;;  %v397_v25 = vadd.f32 %v931_v23, %v929_v22 }
  0x64   : > { %v935_v26 = vpop.eup %934 }
  0x65   : > { %v398_v27 = vadd.f32 %v933_v24, %v397_v25 }
  0x67   : > { %v399_v28 = vadd.f32 %v935_v26, %v398_v27 }
  0x69   : > { %936 = vrcp.f32 %v399_v28 }
  0x6a   : > { %938 = vlog2.f32 %v399_v28 }
  0x76   : > { %v937_v36 = vpop.eup %936 }
  0x77   : > { %v939_v38 = vpop.eup %938  ;;  %v401_v39 = vmul.f32 %v937_v36, %v801_v35 }
  0x78   : > { %v488_v40 = vmul.f32 0.6931472, %v939_v38 }
  0x79   : > { %v405_v41 = vmul.f32 %v929_v22, %v401_v39  ;;  %v424_v42 = vmul.f32 %v931_v23, %v401_v39  ;;  %v446_v43 = vmul.f32 %v933_v24, %v401_v39  ;;  %v468_v44 = vmul.f32 %v935_v26, %v401_v39 }
  0x7a   : > { %v489_v45 = vsub.f32 %v488_v40, %v470_v37 }
  0x7b   : > { %v409_v46 = vmul.f32 %v1343_v9, %v405_v41  ;;  %v429_v47 = vmul.f32 %v1345_v10, %v424_v42  ;;  %v451_v48 = vmul.f32 %v1347_v11, %v446_v43  ;;  %v473_v49 = vmul.f32 %v817_v13, %v468_v44  ;;  %416 = vst [vmem:[%s1366_s15] sm:$0xff] %v405_v41 }
  0x7c   : > { %807 = vst [vmem:[%s1366_s15 + $0x8] sm:$0xff] %v424_v42  ;;  %814 = vst [vmem:[%s1366_s15 + $0x10] sm:$0xff] %v446_v43  ;;  %v490_v50 = vmul.f32 %v801_v35, %v489_v45 }
  0x7d   : > { %821 = vst [vmem:[%s1366_s15 + $0x18] sm:$0xff] %v468_v44  ;;  %s1002_s15 = scalar_lea.vmem %s1001_s1, 1024 }
  0x7e   : > { %p1004_p6 = scmp.lt.s32.totalorder %s1002_s15, %s996_s11 }
  0x80   : > { %p1005_p4 = por %p1004_p6, %p1003_p5 }
  0x82   : > { %p1006_p7 = pnand %p1005_p4, %p999_p2 }
  0x84   : > { %1009 = shalt.err (!%p1006_p7)
}
  0x85   : > { %s1010_s24 = scalar_lea.hbm %s1372_s28, 512  ;;  %s1014_s21 = scalar_lea.hbm %s1545_s3, 1024 }
  0x86   : > { %p1011_p1 = scmp.ne.s32.totalorder %s1372_s28, %s1010_s24  ;;  %p1015_p3 = scmp.lt.s32.totalorder %s1372_s28, %s1545_s3 }
  0x87   : > { %p1016_p8 = scmp.lt.s32.totalorder %s1014_s21, %s1010_s24 }
  0x88   : > { %p1012_p10 = pnand %p1011_p1, %p1264_p9 }
  0x89   : > { %p1017_p0 = por %p1016_p8, %p1015_p3 }
  0x8a   : > { %p1013_p13 = pneg %p1012_p10 }
  0x8c   : > { %p1018_p2 = pnand %p1017_p0, %p1013_p13 }
  0x8e   : > { %1021 = shalt.err (!%p1018_p2)
}
  0x8f   : > { %s1174_s1 = smov 128   ;;  %s1175_s11 = smov 8  }
  0x90   : > { %846 = dma.vmem_to_hbm [thread:$0]  (%p1264_p9), %s1379_s10, 512, %s1372_s28, %s1417_s13, %s1174_s1, %s1174_s1, %s1175_s11  }
  0x91   : > { %s1022_s15 = scalar_lea.vmem %s1402_s26, 512  ;;  %s1176_s24 = smov [#allocation10]  }
  0x92   : > { %p1023_p5 = scmp.ne.s32.totalorder %s1402_s26, %s1022_s15  ;;  %s1026_s17 = sshll.u32 %s1176_s24, 4  ;;  %s1027_s17 = int_to_ptr.vmem [resolvable:$false] %s1026_s17 }
  0x93   : > { %s1028_s7 = scalar_lea.vmem %s1027_s17, 1024  ;;  %p1029_p7 = scmp.lt.s32.totalorder %s1402_s26, %s1027_s17 }
  0x94   : > { %p1024_p6 = pnand %p1023_p5, %p1264_p9  ;;  %p1030_p1 = scmp.lt.s32.totalorder %s1028_s7, %s1022_s15 }
  0x96   : > { %p1025_p4 = pneg %p1024_p6  ;;  %p1031_p10 = por %p1030_p1, %p1029_p7 }
  0x98   : > { %p1032_p13 = pnand %p1031_p10, %p1025_p4 }
  0x9a   : > { %1035 = shalt.err (!%p1032_p13)
}
  0x9b   : > { %s1036_s21 = scalar_lea.hbm %s1377_s27, 512  ;;  %s1040_s25 = scalar_lea.hbm %s1546_s4, 1024 }
  0x9c   : > { %p1037_p3 = scmp.ne.s32.totalorder %s1377_s27, %s1036_s21  ;;  %p1041_p2 = scmp.lt.s32.totalorder %s1377_s27, %s1546_s4 }
  0x9d   : > { %p1042_p5 = scmp.lt.s32.totalorder %s1040_s25, %s1036_s21 }
  0x9e   : > { %p1038_p8 = pnand %p1037_p3, %p1264_p9 }
  0x9f   : > { %p1043_p6 = por %p1042_p5, %p1041_p2 }
  0xa0   : > { %p1039_p0 = pneg %p1038_p8 }
  0xa2   : > { %p1044_p4 = pnand %p1043_p6, %p1039_p0 }
  0xa4   : > { %1047 = shalt.err (!%p1044_p4)
}
  0xa5   : > { %847 = dma.vmem_to_hbm [thread:$0]  (%p1264_p9), %s1402_s26, 512, %s1377_s27, %s1417_s13, %s1174_s1, %s1174_s1, %s1175_s11  }
  0xa6   : > { %412 = vst [vmem:[%s1382_s12] sm:$0xff] %v409_v46  ;;  %805 = vst [vmem:[%s1382_s12 + $0x8] sm:$0xff] %v429_v47  ;;  %s496_s15 = scalar_lea.sflag [#allocation4], %s1323_s0  ;;  %s1048_s17 = scalar_lea.vmem %s1397_s20, 512 }
  0xa7   : > { %812 = vst [vmem:[%s1382_s12 + $0x10] sm:$0xff] %v451_v48  ;;  %819 = vst [vmem:[%s1382_s12 + $0x18] sm:$0xff] %v473_v49  ;;  %p1049_p7 = scmp.ne.s32.totalorder %s1397_s20, %s1048_s17  ;;  %s1177_s7 = smov [#allocation7]  }
  0xa8   : > { %494 = vst [vmem:[%s1389_s29] sm:$0xff] %v490_v50  ;;  %s1052_s21 = sshll.u32 %s1177_s7, 4  ;;  %s1053_s21 = int_to_ptr.vmem [resolvable:$false] %s1052_s21 }
  0xa9   : > { %p1050_p1 = pnand %p1049_p7, %p1264_p9  ;;  %s1054_s10 = scalar_lea.vmem %s1053_s21, 1024 }
  0xaa   : > { %p1055_p13 = scmp.lt.s32.totalorder %s1397_s20, %s1053_s21  ;;  %p1056_p3 = scmp.lt.s32.totalorder %s1054_s10, %s1048_s17 }
  0xab   : > { %p1051_p10 = pneg %p1050_p1 }
  0xac   : > { %p1057_p8 = por %p1056_p3, %p1055_p13 }
  0xae   : > { %p1058_p0 = pnand %p1057_p8, %p1051_p10 }
  0xb0   : > { %1061 = shalt.err (!%p1058_p0)
}
  0xb1   : > { %s1062_s27 = scalar_lea.hbm %s1395_s16, 512  ;;  %s1066_s29 = scalar_lea.hbm %s1544_s2, 1024 }
  0xb2   : > { %p1063_p2 = scmp.ne.s32.totalorder %s1395_s16, %s1062_s27  ;;  %p1067_p4 = scmp.lt.s32.totalorder %s1395_s16, %s1544_s2 }
  0xb3   : > { %p1068_p7 = scmp.lt.s32.totalorder %s1066_s29, %s1062_s27 }
  0xb4   : > { %p1064_p5 = pnand %p1063_p2, %p1264_p9 }
  0xb5   : > { %p1069_p1 = por %p1068_p7, %p1067_p4 }
  0xb6   : > { %p1065_p6 = pneg %p1064_p5 }
  0xb8   : > { %p1070_p10 = pnand %p1069_p1, %p1065_p6 }
  0xba   : > { %1073 = shalt.err (!%p1070_p10)
}
  0xbb   : > { %845 = dma.vmem_to_hbm [thread:$0]  (%p1264_p9), %s1397_s20, 512, %s1395_s16, %s496_s15, %s1174_s1, %s1174_s1, %s1175_s11  }
  0xbc   : > { %s511_s25 = scalar_lea.sflag [#allocation12], %s1323_s0  ;;  %s1074_s14 = scalar_lea.vmem %s1413_s9, 128 }
  0xbd   : > { %p1075_p13 = scmp.ne.s32.totalorder %s1413_s9, %s1074_s14  ;;  %s1178_s24 = smov [#allocation11]  }
  0xbe   : > { %s1078_s17 = sshll.u32 %s1178_s24, 4  ;;  %s1079_s17 = int_to_ptr.vmem [resolvable:$false] %s1078_s17 }
  0xbf   : > { %p1076_p3 = pnand %p1075_p13, %p1264_p9  ;;  %s1080_s7 = scalar_lea.vmem %s1079_s17, 256 }
  0xc0   : > { %p1081_p0 = scmp.lt.s32.totalorder %s1413_s9, %s1079_s17  ;;  %p1082_p2 = scmp.lt.s32.totalorder %s1080_s7, %s1074_s14 }
  0xc1   : > { %p1077_p8 = pneg %p1076_p3 }
  0xc2   : > { %p1083_p5 = por %p1082_p2, %p1081_p0 }
  0xc4   : > { %p1084_p6 = pnand %p1083_p5, %p1077_p8 }
  0xc6   : > { %1087 = shalt.err (!%p1084_p6)
}
  0xc7   : > { %s1088_s20 = scalar_lea.hbm %s1411_s30, 128  ;;  %s1092_s1 = scalar_lea.hbm %s1547_s5, 256 }
  0xc8   : > { %p1089_p4 = scmp.ne.s32.totalorder %s1411_s30, %s1088_s20  ;;  %p1093_p10 = scmp.lt.s32.totalorder %s1411_s30, %s1547_s5 }
  0xc9   : > { %p1094_p13 = scmp.lt.s32.totalorder %s1092_s1, %s1088_s20 }
  0xca   : > { %p1090_p7 = pnand %p1089_p4, %p1264_p9 }
  0xcb   : > { %p1095_p3 = por %p1094_p13, %p1093_p10 }
  0xcc   : > { %p1091_p1 = pneg %p1090_p7 }
  0xce   : > { %p1096_p8 = pnand %p1095_p3, %p1091_p1 }
  0xd0   : > { %1099 = shalt.err (!%p1096_p8)
}
  0xd1   : > { %848 = dma.vmem_to_hbm [thread:$0]  (%p1264_p9), %s1413_s9, 128, %s1411_s30, %s511_s25  }
  0xd2 PF: > { %s588_s21 = sand.u32 1, %s1146_s18   ;;  %p861_p0 = pnand %p785_p12, %p1273_p11 }
  0xd3   : > { %s589_s10 = scalar_lea.sflag [#allocation4], %s588_s21 }
  0xd4   : > { %p862_p2 = pneg %p861_p0 }
  0xd6   : > { %1133 = dma.done.wait (%p862_p2), %s589_s10, 512  }
  0xd7   : > { %1135 = vsyncadd (%p862_p2), %s589_s10, 4294966784  ;;  %s1564_s27 = sadd.s32 4294967294, %s1166_s23  }
  0xd8   : > { %s597_s12 = sand.u32 1, %s1564_s27  }
  0xd9   : > { %s598_s26 = scalar_lea.sflag [#allocation9], %s597_s12 }
  0xda   : > { %1137 = dma.done.wait (%p862_p2), %s598_s26, 1024  }
  0xdb   : > { %1139 = vsyncadd (%p862_p2), %s598_s26, 4294966272  ;;  %s616_s6 = scalar_lea.sflag [#allocation12], %s588_s21 }
  0xdc   : > { %1141 = dma.done.wait (%p862_p2), %s616_s6, 128  }
  0xdd   : > { %1143 = vsyncadd (%p862_p2), %s616_s6, 4294967168  ;;  %s31_s23 = sadd.s32 1, %s1166_s23   ;;  %s1565_s8 = sld [smem:[#allocation18_spill]] }
  0xde   : > { %p28_p9 = scmp.ge.s32.totalorder %s31_s23, 4   ;;  %s1566_s20 = sld [smem:[#allocation20_spill]] }
  0xdf   : > { %s1567_s9 = sld [smem:[#allocation19_spill]]  ;;  %s1568_s18 = smov %s1150_s19 }
  0xe0   : > { %s1570_s21 = smov %s1162_s22 }
  0xe1   :  { %30 = sbr.rel (!%p28_p9) target bundleno = 15 (0xf), region = 151 }
  0xe3   : > { %s1569_s19 = smov %s1565_s8 }
  0xe5   : > { %s1571_s22 = smov %s1567_s9 }
  0xe6   :  { %621 = vsyncpa [#allocation3], 1 }
  0xe7   :  { %623 = vsyncpa [#allocation3 + $0x1], 1 }
  0xe8   :  { %624 = vsyncpa [#allocation6], 1 }
  0xe9   :  { %626 = vsyncpa [#allocation6 + $0x1], 1 }
  0xea   :  { %627 = vsyncpa [#allocation4], 1 }
  0xeb   :  { %629 = vsyncpa [#allocation4 + $0x1], 1 }
  0xec   :  { %630 = vsyncpa [#allocation9], 1 }
  0xed   :  { %632 = vsyncpa [#allocation9 + $0x1], 1 }
  0xee   :  { %633 = vsyncpa [#allocation12], 1 }
  0xef   :  { %635 = vsyncpa [#allocation12 + $0x1], 1 }

</bundles_post_ra>
